<compile_context>
chip_gen: v5e
topology: v5e:2x2
jax: 0.10.0
libtpu: 0.0.40
codegen_flags: <defaults>
</compile_context>

<pallas_src>
import functools

import jax
import jax.numpy as jnp
from jax import lax
from jax.experimental import pallas as pl
from jax.experimental.pallas import tpu as pltpu

_TB_MAX = 4096  # batch tile upper bound (lane axis inside kernel); multiple of 128


def _round_up(x, m):
    return (x + m - 1) // m * m


def _device_kind():
    try:
        return jax.devices()[0].device_kind.lower()
    except Exception:
        return ""


_KIND = _device_kind()
# v6e / v7x have bf16 VALUs -> run bias+ReLU at bf16 there; keep f32 elsewhere.
_BF16_ELEMENTWISE = ("v6" in _KIND) or ("v7" in _KIND) or ("7x" in _KIND)
# v7x has 2 TensorCores per chip: keep >= 2 grid steps so "parallel" shards them.
_MIN_GRID_STEPS = 2 if (("v7" in _KIND) or ("7x" in _KIND)) else 1


def _mlp_kernel(x_ref,
                w1, b1, w2, b2, w3, b3, w4, b4,
                w5c, b5,
                o_ref, *, bf16_elementwise):
    """Fused 5-layer MLP (BN folded), activations kept in (features, batch)."""
    # x tile is (TB, in_dim); cast once to bf16.  Layer 1 contracts the shared
    # in_dim axis of both operands (rhs-transposed matmul) so no f32 XLU
    # transpose of the lane-padded x tile is materialized.
    x_bf16 = x_ref[...].astype(jnp.bfloat16)

    def post(z, b_ref):
        if bf16_elementwise:
            # bf16 bias-add + ReLU: half the vreg traffic on bf16-capable VALUs.
            return jnp.maximum(z.astype(jnp.bfloat16)
                               + b_ref[...].astype(jnp.bfloat16), 0)
        return jnp.maximum(z + b_ref[...], 0.0).astype(jnp.bfloat16)

    z = lax.dot_general(w1[...], x_bf16,
                        dimension_numbers=(((1,), (1,)), ((), ())),
                        preferred_element_type=jnp.float32)          # (64,  TB)
    h = post(z, b1)
    z = jnp.dot(w2[...], h, preferred_element_type=jnp.float32)      # (128, TB)
    h = post(z, b2)
    z = jnp.dot(w3[...], h, preferred_element_type=jnp.float32)      # (64,  TB)
    h = post(z, b3)
    z = jnp.dot(w4[...], h, preferred_element_type=jnp.float32)      # (16,  TB)
    h = post(z, b4)

    # Layer 5 (16 -> 1): broadcast-multiply + sublane reduce (VPU/XLU), not a
    # sliver-sized MXU dot.
    logits = jnp.sum(h * w5c[...], axis=0, keepdims=True) + b5[...]  # (1, TB)

    # Sigmoid: exp on the EUP; approx reciprocal rides the (free) EUP slot.
    o_ref[...] = pl.reciprocal(1.0 + jnp.exp(-logits), approx=True)


def init_params(key, in_dim):
    """PyTorch-shaped params with inference-mode BN folded into the Linears."""
    dims = [in_dim, 64, 128, 64, 16, 1]
    keys = jax.random.split(key, 32)
    ki = 0
    eps = 1e-5
    params = {}
    for li in range(5):
        fan_in, fan_out = dims[li], dims[li + 1]
        bound = fan_in ** -0.5
        # Torch layout: W is (out, in); kernel computes W @ X directly.
        w = jax.random.uniform(keys[ki], (fan_out, fan_in), jnp.float32,
                               -bound, bound); ki += 1
        b = jax.random.uniform(keys[ki], (fan_out,), jnp.float32,
                               -bound, bound); ki += 1
        if li < 4:  # BatchNorm1d after the first four Linear layers
            gamma = 1.0 + 0.1 * jax.random.normal(keys[ki], (fan_out,), jnp.float32); ki += 1
            beta = 0.1 * jax.random.normal(keys[ki], (fan_out,), jnp.float32); ki += 1
            rmean = 0.1 * jax.random.normal(keys[ki], (fan_out,), jnp.float32); ki += 1
            rvar = 1.0 + 0.1 * jax.random.uniform(keys[ki], (fan_out,), jnp.float32); ki += 1
            scale = gamma / jnp.sqrt(rvar + eps)
            shift = beta - rmean * scale
            w = w * scale[:, None]                 # exact BN fold (inference)
            b = b * scale + shift
            params[f"w{li+1}"] = w.astype(jnp.bfloat16)          # MXU operand
            params[f"b{li+1}"] = b.reshape(fan_out, 1)           # f32, (C,1)
        else:
            params["w5c"] = jnp.transpose(w)                     # (16, 1) f32
            params["b5"] = b.reshape(1, 1)                       # (1, 1) f32
    return params


@jax.jit
def dnn_forward(x, params):
    n, in_dim = x.shape
    # Big tiles to amortize per-grid-step overhead; cap so v7x gets >= 2 steps.
    tb = min(_TB_MAX, _round_up(pl.cdiv(n, _MIN_GRID_STEPS), 128))
    n_pad = _round_up(n, tb)
    if n_pad != n:
        x = jnp.pad(x, ((0, n_pad - n), (0, 0)))
    grid = (n_pad // tb,)

    def const_spec(shape):
        # `shape` bound as a function arg -> no late-binding closure bug.
        return pl.BlockSpec(shape, lambda i: (0, 0))

    p = params
    args = (x,
            p["w1"], p["b1"], p["w2"], p["b2"],
            p["w3"], p["b3"], p["w4"], p["b4"],
            p["w5c"], p["b5"])
    in_specs = [pl.BlockSpec((tb, in_dim), lambda i: (i, 0))]
    in_specs += [const_spec(a.shape) for a in args[1:]]

    # Advisory cost hint for XLA scheduling around the custom call.
    flops = 2 * n_pad * (in_dim * 64 + 64 * 128 + 128 * 64 + 64 * 16 + 16)
    param_bytes = sum(int(a.size) * a.dtype.itemsize for a in args[1:])
    bytes_accessed = n_pad * in_dim * 4 + n_pad * 4 + param_bytes

    out = pl.pallas_call(
        functools.partial(_mlp_kernel, bf16_elementwise=_BF16_ELEMENTWISE),
        out_shape=jax.ShapeDtypeStruct((1, n_pad), jnp.float32),
        grid=grid,
        in_specs=in_specs,
        out_specs=pl.BlockSpec((1, tb), lambda i: (0, i)),
        compiler_params=pltpu.CompilerParams(
            dimension_semantics=("parallel",)),
        cost_estimate=pl.CostEstimate(
            flops=flops, transcendentals=n_pad,
            bytes_accessed=bytes_accessed),
    )(*args)

    result = out[0, :n]
    if n == 1:
        return result[0]       # match torch's out.squeeze() -> 0-d for one row
    return result


def dnn_reference(x, params):
    """Pure-JAX reference mirroring the kernel's numerics (bf16 MXU, folded BN)."""
    a = x.astype(jnp.bfloat16)                                   # (N, in_dim)

    def post(z, b):
        if _BF16_ELEMENTWISE:
            return jnp.maximum(z.astype(jnp.bfloat16) + b.astype(jnp.bfloat16), 0)
        return jnp.maximum(z + b, 0.0).astype(jnp.bfloat16)

    z = lax.dot_general(params["w1"], a,
                        dimension_numbers=(((1,), (1,)), ((), ())),
                        preferred_element_type=jnp.float32)      # (64, N)
    h = post(z, params["b1"])
    for li in range(2, 5):
        z = jnp.dot(params[f"w{li}"], h, preferred_element_type=jnp.float32)
        h = post(z, params[f"b{li}"])
    logits = jnp.sum(h * params["w5c"], axis=0, keepdims=True) + params["b5"]
    return jax.nn.sigmoid(logits)[0]


if __name__ == "__main__":
    key = jax.random.PRNGKey(0)
    kx, kp = jax.random.split(key)

    in_dim = 32
    batch = 8
    x = jax.random.normal(kx, (batch, in_dim), jnp.float32)
    params = init_params(kp, in_dim)

    out = jax.block_until_ready(dnn_forward(x, params))
    ref = dnn_reference(x, params)

    assert out.shape == (batch,), out.shape
    assert jnp.allclose(out, ref, atol=2e-3, rtol=2e-3), (out, ref)

    print("KERNEL_OK")
</pallas_src>

<mosaic_0001>
module attributes {stable_mosaic.version = 11 : i64} {
  func.func @_mlp_kernel(%arg0: i32, %arg1: memref<128x32xf32, #tpu.memory_space<vmem>>, %arg2: memref<64x32xbf16, #tpu.memory_space<vmem>>, %arg3: memref<64x1xf32, #tpu.memory_space<vmem>>, %arg4: memref<128x64xbf16, #tpu.memory_space<vmem>>, %arg5: memref<128x1xf32, #tpu.memory_space<vmem>>, %arg6: memref<64x128xbf16, #tpu.memory_space<vmem>>, %arg7: memref<64x1xf32, #tpu.memory_space<vmem>>, %arg8: memref<16x64xbf16, #tpu.memory_space<vmem>>, %arg9: memref<16x1xf32, #tpu.memory_space<vmem>>, %arg10: memref<16x1xf32, #tpu.memory_space<vmem>>, %arg11: memref<1x1xf32, #tpu.memory_space<vmem>>, %arg12: memref<1x128xf32, #tpu.memory_space<vmem>>) attributes {dimension_semantics = [#tpu.dimension_semantics<parallel>], iteration_bounds = array<i64: 1>, scalar_prefetch = 0 : i64, scratch_operands = 0 : i64, tpu.core_type = #tpu.core_type<tc>, window_params = [{transform_indices = @transform_0, window_bounds = array<i64: 128, 32>}, {pipeline_mode = #tpu.pipeline_mode<synchronous>, transform_indices = @transform_1, window_bounds = array<i64: 64, 32>}, {pipeline_mode = #tpu.pipeline_mode<synchronous>, transform_indices = @transform_2, window_bounds = array<i64: 64, 1>}, {pipeline_mode = #tpu.pipeline_mode<synchronous>, transform_indices = @transform_3, window_bounds = array<i64: 128, 64>}, {pipeline_mode = #tpu.pipeline_mode<synchronous>, transform_indices = @transform_4, window_bounds = array<i64: 128, 1>}, {pipeline_mode = #tpu.pipeline_mode<synchronous>, transform_indices = @transform_5, window_bounds = array<i64: 64, 128>}, {pipeline_mode = #tpu.pipeline_mode<synchronous>, transform_indices = @transform_6, window_bounds = array<i64: 64, 1>}, {pipeline_mode = #tpu.pipeline_mode<synchronous>, transform_indices = @transform_7, window_bounds = array<i64: 16, 64>}, {pipeline_mode = #tpu.pipeline_mode<synchronous>, transform_indices = @transform_8, window_bounds = array<i64: 16, 1>}, {pipeline_mode = #tpu.pipeline_mode<synchronous>, transform_indices = @transform_9, window_bounds = array<i64: 16, 1>}, {pipeline_mode = #tpu.pipeline_mode<synchronous>, transform_indices = @transform_10, window_bounds = array<i64: 1, 1>}, {transform_indices = @transform_11, window_bounds = array<i64: 1, 128>}]} {
    %c0 = arith.constant 0 : index
    %c0_0 = arith.constant 0 : index
    %0 = vector.load %arg1[%c0, %c0_0] : memref<128x32xf32, #tpu.memory_space<vmem>>, vector<128x32xf32>
    %1 = arith.truncf %0 : vector<128x32xf32> to vector<128x32xbf16>
    %c0_1 = arith.constant 0 : index
    %c0_2 = arith.constant 0 : index
    %2 = vector.load %arg2[%c0_1, %c0_2] : memref<64x32xbf16, #tpu.memory_space<vmem>>, vector<64x32xbf16>
    %cst = arith.constant dense<0.000000e+00> : vector<64x128xf32>
    %3 = tpu.matmul %2, %1, %cst {dimension_numbers = #tpu.dot_dimension_numbers<[1], [1], [0], [0], [0, 0, 1, 0], [], []>} : vector<64x32xbf16>, vector<128x32xbf16>, vector<64x128xf32> -> vector<64x128xf32>
    %c0_3 = arith.constant 0 : index
    %c0_4 = arith.constant 0 : index
    %4 = vector.load %arg3[%c0_3, %c0_4] : memref<64x1xf32, #tpu.memory_space<vmem>>, vector<64x1xf32>
    %5 = vector.broadcast %4 : vector<64x1xf32> to vector<64x128xf32>
    %6 = arith.addf %3, %5 : vector<64x128xf32>
    %cst_5 = arith.constant 0.000000e+00 : f32
    %7 = vector.broadcast %cst_5 : f32 to vector<64x128xf32>
    %8 = arith.maximumf %6, %7 : vector<64x128xf32>
    %9 = arith.truncf %8 : vector<64x128xf32> to vector<64x128xbf16>
    %c0_6 = arith.constant 0 : index
    %c0_7 = arith.constant 0 : index
    %10 = vector.load %arg4[%c0_6, %c0_7] : memref<128x64xbf16, #tpu.memory_space<vmem>>, vector<128x64xbf16>
    %cst_8 = arith.constant dense<0.000000e+00> : vector<128x128xf32>
    %11 = tpu.matmul %10, %9, %cst_8 {dimension_numbers = #tpu.dot_dimension_numbers<[1], [0], [0], [1], [0, 0, 1, 1], [], []>} : vector<128x64xbf16>, vector<64x128xbf16>, vector<128x128xf32> -> vector<128x128xf32>
    %c0_9 = arith.constant 0 : index
    %c0_10 = arith.constant 0 : index
    %12 = vector.load %arg5[%c0_9, %c0_10] : memref<128x1xf32, #tpu.memory_space<vmem>>, vector<128x1xf32>
    %13 = vector.broadcast %12 : vector<128x1xf32> to vector<128x128xf32>
    %14 = arith.addf %11, %13 : vector<128x128xf32>
    %cst_11 = arith.constant 0.000000e+00 : f32
    %15 = vector.broadcast %cst_11 : f32 to vector<128x128xf32>
    %16 = arith.maximumf %14, %15 : vector<128x128xf32>
    %17 = arith.truncf %16 : vector<128x128xf32> to vector<128x128xbf16>
    %c0_12 = arith.constant 0 : index
    %c0_13 = arith.constant 0 : index
    %18 = vector.load %arg6[%c0_12, %c0_13] : memref<64x128xbf16, #tpu.memory_space<vmem>>, vector<64x128xbf16>
    %cst_14 = arith.constant dense<0.000000e+00> : vector<64x128xf32>
    %19 = tpu.matmul %18, %17, %cst_14 {dimension_numbers = #tpu.dot_dimension_numbers<[1], [0], [0], [1], [0, 0, 1, 1], [], []>} : vector<64x128xbf16>, vector<128x128xbf16>, vector<64x128xf32> -> vector<64x128xf32>
    %c0_15 = arith.constant 0 : index
    %c0_16 = arith.constant 0 : index
    %20 = vector.load %arg7[%c0_15, %c0_16] : memref<64x1xf32, #tpu.memory_space<vmem>>, vector<64x1xf32>
    %21 = vector.broadcast %20 : vector<64x1xf32> to vector<64x128xf32>
    %22 = arith.addf %19, %21 : vector<64x128xf32>
    %cst_17 = arith.constant 0.000000e+00 : f32
    %23 = vector.broadcast %cst_17 : f32 to vector<64x128xf32>
    %24 = arith.maximumf %22, %23 : vector<64x128xf32>
    %25 = arith.truncf %24 : vector<64x128xf32> to vector<64x128xbf16>
    %c0_18 = arith.constant 0 : index
    %c0_19 = arith.constant 0 : index
    %26 = vector.load %arg8[%c0_18, %c0_19] : memref<16x64xbf16, #tpu.memory_space<vmem>>, vector<16x64xbf16>
    %cst_20 = arith.constant dense<0.000000e+00> : vector<16x128xf32>
    %27 = tpu.matmul %26, %25, %cst_20 {dimension_numbers = #tpu.dot_dimension_numbers<[1], [0], [0], [1], [0, 0, 1, 1], [], []>} : vector<16x64xbf16>, vector<64x128xbf16>, vector<16x128xf32> -> vector<16x128xf32>
    %c0_21 = arith.constant 0 : index
    %c0_22 = arith.constant 0 : index
    %28 = vector.load %arg9[%c0_21, %c0_22] : memref<16x1xf32, #tpu.memory_space<vmem>>, vector<16x1xf32>
    %29 = vector.broadcast %28 : vector<16x1xf32> to vector<16x128xf32>
    %30 = arith.addf %27, %29 : vector<16x128xf32>
    %cst_23 = arith.constant 0.000000e+00 : f32
    %31 = vector.broadcast %cst_23 : f32 to vector<16x128xf32>
    %32 = arith.maximumf %30, %31 : vector<16x128xf32>
    %33 = arith.truncf %32 : vector<16x128xf32> to vector<16x128xbf16>
    %c0_24 = arith.constant 0 : index
    %c0_25 = arith.constant 0 : index
    %34 = vector.load %arg10[%c0_24, %c0_25] : memref<16x1xf32, #tpu.memory_space<vmem>>, vector<16x1xf32>
    %35 = arith.extf %33 : vector<16x128xbf16> to vector<16x128xf32>
    %36 = vector.broadcast %34 : vector<16x1xf32> to vector<16x128xf32>
    %37 = arith.mulf %35, %36 : vector<16x128xf32>
    %cst_26 = arith.constant dense<0.000000e+00> : vector<128xf32>
    %38 = vector.multi_reduction <add>, %37, %cst_26 [0] : vector<16x128xf32> to vector<128xf32>
    %39 = vector.shape_cast %38 : vector<128xf32> to vector<1x128xf32>
    %c0_27 = arith.constant 0 : index
    %c0_28 = arith.constant 0 : index
    %40 = vector.load %arg11[%c0_27, %c0_28] : memref<1x1xf32, #tpu.memory_space<vmem>>, vector<1x1xf32>
    %41 = vector.broadcast %40 : vector<1x1xf32> to vector<1x128xf32>
    %42 = arith.addf %39, %41 : vector<1x128xf32>
    %cst_29 = arith.constant 0.000000e+00 : f32
    %43 = vector.broadcast %cst_29 : f32 to vector<1x128xf32>
    %44 = arith.subf %43, %42 : vector<1x128xf32>
    %45 = math.exp %44 : vector<1x128xf32>
    %cst_30 = arith.constant 1.000000e+00 : f32
    %46 = vector.broadcast %cst_30 : f32 to vector<1x128xf32>
    %47 = arith.addf %46, %45 : vector<1x128xf32>
    %48 = tpu.reciprocal %47 {approx = true} : vector<1x128xf32> -> vector<1x128xf32>
    %c0_31 = arith.constant 0 : index
    %c0_32 = arith.constant 0 : index
    %49 = vector.load %arg12[%c0_31, %c0_32] : memref<1x128xf32, #tpu.memory_space<vmem>>, vector<1x128xf32>
    tpu.vector_store %arg12[%c0_31, %c0_32], %48 {strides = array<i32>} : memref<1x128xf32, #tpu.memory_space<vmem>>, vector<1x128xf32>,
    return
  }
  func.func @transform_0(%arg0: i32) -> (i32, i32) {
    %c0_i32 = arith.constant 0 : i32
    %c0_i32_0 = arith.constant 0 : i32
    return %arg0, %c0_i32 : i32, i32
  }
  func.func @transform_1(%arg0: i32) -> (i32, i32) {
    %c0_i32 = arith.constant 0 : i32
    %c0_i32_0 = arith.constant 0 : i32
    %c0_i32_1 = arith.constant 0 : i32
    return %c0_i32, %c0_i32_0 : i32, i32
  }
  func.func @transform_2(%arg0: i32) -> (i32, i32) {
    %c0_i32 = arith.constant 0 : i32
    %c0_i32_0 = arith.constant 0 : i32
    %c0_i32_1 = arith.constant 0 : i32
    return %c0_i32, %c0_i32_0 : i32, i32
  }
  func.func @transform_3(%arg0: i32) -> (i32, i32) {
    %c0_i32 = arith.constant 0 : i32
    %c0_i32_0 = arith.constant 0 : i32
    %c0_i32_1 = arith.constant 0 : i32
    return %c0_i32, %c0_i32_0 : i32, i32
  }
  func.func @transform_4(%arg0: i32) -> (i32, i32) {
    %c0_i32 = arith.constant 0 : i32
    %c0_i32_0 = arith.constant 0 : i32
    %c0_i32_1 = arith.constant 0 : i32
    return %c0_i32, %c0_i32_0 : i32, i32
  }
  func.func @transform_5(%arg0: i32) -> (i32, i32) {
    %c0_i32 = arith.constant 0 : i32
    %c0_i32_0 = arith.constant 0 : i32
    %c0_i32_1 = arith.constant 0 : i32
    return %c0_i32, %c0_i32_0 : i32, i32
  }
  func.func @transform_6(%arg0: i32) -> (i32, i32) {
    %c0_i32 = arith.constant 0 : i32
    %c0_i32_0 = arith.constant 0 : i32
    %c0_i32_1 = arith.constant 0 : i32
    return %c0_i32, %c0_i32_0 : i32, i32
  }
  func.func @transform_7(%arg0: i32) -> (i32, i32) {
    %c0_i32 = arith.constant 0 : i32
    %c0_i32_0 = arith.constant 0 : i32
    %c0_i32_1 = arith.constant 0 : i32
    return %c0_i32, %c0_i32_0 : i32, i32
  }
  func.func @transform_8(%arg0: i32) -> (i32, i32) {
    %c0_i32 = arith.constant 0 : i32
    %c0_i32_0 = arith.constant 0 : i32
    %c0_i32_1 = arith.constant 0 : i32
    return %c0_i32, %c0_i32_0 : i32, i32
  }
  func.func @transform_9(%arg0: i32) -> (i32, i32) {
    %c0_i32 = arith.constant 0 : i32
    %c0_i32_0 = arith.constant 0 : i32
    %c0_i32_1 = arith.constant 0 : i32
    return %c0_i32, %c0_i32_0 : i32, i32
  }
  func.func @transform_10(%arg0: i32) -> (i32, i32) {
    %c0_i32 = arith.constant 0 : i32
    %c0_i32_0 = arith.constant 0 : i32
    %c0_i32_1 = arith.constant 0 : i32
    return %c0_i32, %c0_i32_0 : i32, i32
  }
  func.func @transform_11(%arg0: i32) -> (i32, i32) {
    %c0_i32 = arith.constant 0 : i32
    %c0_i32_0 = arith.constant 0 : i32
    return %c0_i32, %arg0 : i32, i32
  }
}

</mosaic_0001>

<bundles_post_ra>
// kernel: dnn_forward.1
= control target key start
LH: loop header
LB: loop body
LE: loop exit
PB: predicated region body
PF: predicated region fallthrough
CT: control target
= control target key end

     0   :  { %vm141_vm0 = vcmask 261120   ;;  %v781_v2 = vmov 0   ;;  %vm371_vm1 = vcmask 523264   ;;  %s1076_s0 = inlined_call_operand.vmem [shape: f32[128,32], index: 0, kind: input, shape index: {}]   ;;  %s1077_s2 = inlined_call_operand.vmem [shape: f32[64,1], index: 2, kind: input, shape index: {}]   ;;  %s1078_s4 = inlined_call_operand.vmem [shape: f32[128,1], index: 4, kind: input, shape index: {}]   ;;  %s1079_s1 = inlined_call_operand.vmem [shape: bf16[64,32], index: 1, kind: input, shape index: {}]   ;;  %s1080_s6 = inlined_call_operand.vmem [shape: f32[64,1], index: 6, kind: input, shape index: {}]   ;;  %s1081_s10 = inlined_call_operand.<no memory space> [shape: f32[1,1], index: 10, kind: input, shape index: {}]   ;;  %s1082_s8 = inlined_call_operand.vmem [shape: f32[16,1], index: 8, kind: input, shape index: {}]   ;;  %s1083_s9 = inlined_call_operand.vmem [shape: f32[16,1], index: 9, kind: input, shape index: {}]   ;;  %s1084_s3 = inlined_call_operand.vmem [shape: bf16[128,64], index: 3, kind: input, shape index: {}]   ;;  %s1085_s5 = inlined_call_operand.vmem [shape: bf16[64,128], index: 5, kind: input, shape index: {}]   ;;  %s1086_s7 = inlined_call_operand.vmem [shape: bf16[16,64], index: 7, kind: input, shape index: {}]   ;;  %s1087_s11 = inlined_call_operand.vmem [shape: f32[1,128], index: 11, kind: output, shape index: {}]  }
   0x1   :  { %v55_v0 = vld [vmem:[%s1076_s0 + $0x70] sm:$0xff]  ;;  %v56_v1 = vld [vmem:[%s1076_s0 + $0x78] sm:$0xff]  ;;  %774 = vset.pattern.permute.xlu0 %v781_v2  ;;  %775 = vset.pattern.permute.xlu1 %v781_v2  ;;  %v53_v4 = vld [vmem:[%s1076_s0 + $0x60] sm:$0xff] }
   0x2   :  { %v64_v3 = vpack.c.bf16 %v56_v1, %v55_v0  ;;  %776 = vset.pattern.permute.xlu2 %v781_v2  ;;  %v54_v5 = vld [vmem:[%s1076_s0 + $0x68] sm:$0xff]  ;;  %v79_v6 = vld [vmem:[%s1077_s2 + $0x30] sm:$0xff]  ;;  %v77_v8 = vld [vmem:[%s1077_s2 + $0x20] sm:$0xff]  ;;  %v16_v0 = vstv %s1081_s10 }
   0x3   :  { %113 = vperm.xlu0 %774, %v79_v6   ;;  %v63_v9 = vpack.c.bf16 %v54_v5, %v53_v4  ;;  %103 = vperm.xlu1 %775, %v77_v8   ;;  %v80_v10 = vld [vmem:[%s1077_s2 + $0x38] sm:$0xff]  ;;  %v51_v12 = vld [vmem:[%s1076_s0 + $0x50] sm:$0xff]  ;;  %v78_v14 = vld [vmem:[%s1077_s2 + $0x28] sm:$0xff]  ;;  %17 = vst [vmem:[#allocation2] sm:$0x1] %v16_v0 }
   0x4   :  { %v176_v7 = vsel %vm141_vm0, %v64_v3, 0  ;;  %v52_v13 = vld [vmem:[%s1076_s0 + $0x58] sm:$0xff]  ;;  %v73_v16 = vld [vmem:[%s1077_s2] sm:$0xff]  ;;  %v50_v19 = vld [vmem:[%s1076_s0 + $0x48] sm:$0xff] }
   0x5   :  { %178 = vmatpush.bf16.xpose.msra.mxu0 %v176_v7  ;;  %v173_v11 = vsel %vm141_vm0, %v63_v9, 0  ;;  %v62_v15 = vpack.c.bf16 %v52_v13, %v51_v12  ;;  %v49_v18 = vld [vmem:[%s1076_s0 + $0x40] sm:$0xff]  ;;  %v74_v20 = vld [vmem:[%s1077_s2 + $0x8] sm:$0xff]  ;;  %v250_v22 = vld [vmem:[%s1078_s4 + $0x78] sm:$0xff] }
   0x6   :  { %v61_v21 = vpack.c.bf16 %v50_v19, %v49_v18  ;;  %v47_v24 = vld [vmem:[%s1076_s0 + $0x30] sm:$0xff]  ;;  %v48_v25 = vld [vmem:[%s1076_s0 + $0x38] sm:$0xff]  ;;  %v247_v26 = vld [vmem:[%s1078_s4 + $0x60] sm:$0xff] }
   0x7   :  { %v170_v17 = vsel %vm141_vm0, %v62_v15, 0  ;;  %v60_v27 = vpack.c.bf16 %v48_v25, %v47_v24  ;;  %v245_v28 = vld [vmem:[%s1078_s4 + $0x50] sm:$0xff]  ;;  %v45_v30 = vld [vmem:[%s1076_s0 + $0x20] sm:$0xff]  ;;  %v46_v31 = vld [vmem:[%s1076_s0 + $0x28] sm:$0xff] }
   0x8   :  { %v167_v23 = vsel %vm141_vm0, %v61_v21, 0  ;;  %v75_v32 = vld [vmem:[%s1077_s2 + $0x10] sm:$0xff]  ;;  %v246_v33 = vld [vmem:[%s1078_s4 + $0x58] sm:$0xff]  ;;  %v59_v34 = vpack.c.bf16 %v46_v31, %v45_v30  ;;  %v244_v35 = vld [vmem:[%s1078_s4 + $0x48] sm:$0xff] }
   0x9   :  { %v164_v29 = vsel %vm141_vm0, %v60_v27, 0  ;;  %93 = vperm.xlu2 %776, %v75_v32   ;;  %v76_v37 = vld [vmem:[%s1077_s2 + $0x18] sm:$0xff]  ;;  %v43_v38 = vld [vmem:[%s1076_s0 + $0x10] sm:$0xff]  ;;  %v239_v42 = vld [vmem:[%s1078_s4 + $0x20] sm:$0xff] }
   0xa   :  { %v161_v36 = vsel %vm141_vm0, %v59_v34, 0  ;;  %v44_v39 = vld [vmem:[%s1076_s0 + $0x18] sm:$0xff]  ;;  %v241_v40 = vld [vmem:[%s1078_s4 + $0x30] sm:$0xff]  ;;  %v41_v44 = vld [vmem:[%s1076_s0] sm:$0xff] }
   0xb   :  { %118 = vperm.xlu0 %774, %v80_v10   ;;  %108 = vperm.xlu1 %775, %v78_v14   ;;  %v58_v41 = vpack.c.bf16 %v44_v39, %v43_v38  ;;  %v42_v45 = vld [vmem:[%s1076_s0 + $0x8] sm:$0xff]  ;;  %v249_v46 = vld [vmem:[%s1078_s4 + $0x70] sm:$0xff]  ;;  %v238_v49 = vld [vmem:[%s1078_s4 + $0x18] sm:$0xff] }
   0xc   :  { %v240_v47 = vld [vmem:[%s1078_s4 + $0x28] sm:$0xff]  ;;  %v57_v48 = vpack.c.bf16 %v42_v45, %v41_v44  ;;  %v235_v52 = vld [vmem:[%s1078_s4] sm:$0xff]  ;;  %v483_v54 = vld [vmem:[%s1080_s6 + $0x30] sm:$0xff] }
   0xd   :  { %179 = vmatpush.bf16.xpose.msra.mxu0 %v173_v11  ;;  %v158_v43 = vsel %vm141_vm0, %v58_v41, 0  ;;  %v248_v51 = vld [vmem:[%s1078_s4 + $0x68] sm:$0xff]  ;;  %v752_v53 = vld [vmem:[%s1079_s1] sm:$0xff]  ;;  %v484_v56 = vld [vmem:[%s1080_s6 + $0x38] sm:$0xff] }
   0xe   :  { %v155_v50 = vsel %vm141_vm0, %v57_v48, 0  ;;  %v243_v55 = vld [vmem:[%s1078_s4 + $0x40] sm:$0xff]  ;;  %v482_v57 = vld [vmem:[%s1080_s6 + $0x28] sm:$0xff]  ;;  %v242_v58 = vld [vmem:[%s1078_s4 + $0x38] sm:$0xff] }
   0xf   :  { %v479_v59 = vld [vmem:[%s1080_s6 + $0x10] sm:$0xff]  ;;  %v753_v60 = vld [vmem:[%s1079_s1 + $0x8] sm:$0xff]  ;;  %v477_v61 = vld [vmem:[%s1080_s6] sm:$0xff] }
  0x10   :  { %v237_v62 = vld [vmem:[%s1078_s4 + $0x10] sm:$0xff]  ;;  %v478_v63 = vld [vmem:[%s1080_s6 + $0x8] sm:$0xff]  ;;  %v630_v3 = vld [vmem:[%s1083_s9] sm:$0xff] }
  0x11   :  { %98 = vperm.xlu2 %776, %v76_v37   ;;  %v593_v1 = vld [vmem:[%s1082_s8 + $0x8] sm:$0xff]  ;;  %v754_v4 = vld [vmem:[%s1079_s1 + $0x10] sm:$0xff]  ;;  %v653_v5 = vld [vmem:[#allocation2] sm:$0x1] }
  0x12   :  { %v236_v2 = vld [vmem:[%s1078_s4 + $0x8] sm:$0xff]  ;;  %v481_v6 = vld [vmem:[%s1080_s6 + $0x20] sm:$0xff]  ;;  %v480_v7 = vld [vmem:[%s1080_s6 + $0x18] sm:$0xff] }
  0x13   :  { %83 = vperm.xlu0 %774, %v73_v16   ;;  %88 = vperm.xlu1 %775, %v74_v20   ;;  %v755_v8 = vld [vmem:[%s1079_s1 + $0x18] sm:$0xff]  ;;  %v592_v9 = vld [vmem:[%s1082_s8] sm:$0xff]  ;;  %v631_v10 = vld [vmem:[%s1083_s9 + $0x8] sm:$0xff] }
  0x14   :  { %v762_v48 = vld [vmem:[%s1084_s3 + $0x30] sm:$0xff] }
  0x15   :  { %180 = vmatpush.bf16.xpose.msra.mxu0 %v170_v17 }
  0x19   :  { %323 = vperm.xlu2 %776, %v249_v46  }
  0x1b   :  { %328 = vperm.xlu0 %774, %v250_v22   ;;  %313 = vperm.xlu1 %775, %v247_v26  }
  0x1d   :  { %181 = vmatpush.bf16.xpose.msra.mxu0 %v167_v23 }
  0x21   :  { %318 = vperm.xlu2 %776, %v248_v51   ;;  %v758_v51 = vld [vmem:[%s1084_s3 + $0x10] sm:$0xff] }
  0x23   :  { %303 = vperm.xlu0 %774, %v245_v28   ;;  %308 = vperm.xlu1 %775, %v246_v33  }
  0x25   :  { %182 = vmatpush.bf16.xpose.msra.mxu0 %v164_v29 }
  0x29   :  { %293 = vperm.xlu2 %776, %v243_v55  }
  0x2b   :  { %298 = vperm.xlu0 %774, %v244_v35   ;;  %283 = vperm.xlu1 %775, %v241_v40  }
  0x2d   :  { %183 = vmatpush.bf16.xpose.msra.mxu0 %v161_v36 }
  0x31   :  { %288 = vperm.xlu2 %776, %v242_v58  }
  0x33   :  { %273 = vperm.xlu0 %774, %v239_v42   ;;  %278 = vperm.xlu1 %775, %v240_v47   ;;  %v756_v47 = vld [vmem:[%s1084_s3] sm:$0xff] }
  0x35   :  { %184 = vmatpush.bf16.xpose.msra.mxu0 %v158_v43 }
  0x39   :  { %263 = vperm.xlu2 %776, %v237_v62  }
  0x3b   :  { %268 = vperm.xlu0 %774, %v238_v49   ;;  %253 = vperm.xlu1 %775, %v235_v52   ;;  %v757_v49 = vld [vmem:[%s1084_s3 + $0x8] sm:$0xff]  ;;  %v759_v52 = vld [vmem:[%s1084_s3 + $0x18] sm:$0xff] }
  0x3d   :  { %185 = vmatpush.bf16.xpose.msra.mxu0 %v155_v50  ;;  %v763_v50 = vld [vmem:[%s1084_s3 + $0x38] sm:$0xff] }
  0x41   :  { %258 = vperm.xlu2 %776, %v236_v2  }
  0x43   :  { %517 = vperm.xlu0 %774, %v483_v54   ;;  %522 = vperm.xlu1 %775, %v484_v56   ;;  %v761_v54 = vld [vmem:[%s1084_s3 + $0x28] sm:$0xff] }
  0x44   :  { %687 = vmatmul.msk.bf16.vlgmr.msra.gmra.mxu0 %vm141_vm0, %v752_v53  ;;  %v760_v53 = vld [vmem:[%s1084_s3 + $0x20] sm:$0xff] }
  0x49   :  { %507 = vperm.xlu2 %776, %v481_v6  }
  0x4b   :  { %512 = vperm.xlu0 %774, %v482_v57   ;;  %497 = vperm.xlu1 %775, %v479_v59  }
  0x51   :  { %502 = vperm.xlu2 %776, %v480_v7  }
  0x53   :  { %487 = vperm.xlu0 %774, %v477_v61   ;;  %492 = vperm.xlu1 %775, %v478_v63  }
  0x54   :  { %688 = vmatmul.msk.bf16.gmra.mxu0 %vm141_vm0, %v753_v60 }
  0x59   :  { %596 = vperm.xlu2 %776, %v592_v9  }
  0x5b   :  { %601 = vperm.xlu0 %774, %v593_v1   ;;  %636 = vperm.xlu1 %775, %v630_v3  }
  0x61   :  { %641 = vperm.xlu2 %776, %v631_v10  }
  0x63   :  { %656 = vperm.xlu0 %774, %v653_v5   ;;  %v94_v20 = vpop.permute.xlu2 %93 }
  0x64   :  { %689 = vmatmul.msk.bf16.gmra.mxu0 %vm141_vm0, %v754_v4 }
  0x6b   :  { %v99_v30 = vpop.permute.xlu2 %98 }
  0x73   :  { %v324_v55 = vpop.permute.xlu2 %323 }
  0x74   :  { %690 = vmatmul.msk.bf16.gmra.mxu0 %vm141_vm0, %v755_v8 }
  0x75   :  { %v104_v17 = vpop.permute.xlu1 %103  ;;  %v114_v18 = vpop.permute.xlu0 %113 }
  0x7b   :  { %v319_v57 = vpop.permute.xlu2 %318 }
  0x7d   :  { %v109_v21 = vpop.permute.xlu1 %108  ;;  %v119_v23 = vpop.permute.xlu0 %118 }
  0x83   :  { %v294_v59 = vpop.permute.xlu2 %293 }
  0x85   :  { %v89_v36 = vpop.permute.xlu1 %88  ;;  %v84_v40 = vpop.permute.xlu0 %83 }
  0x8b   :  { %v289_v62 = vpop.permute.xlu2 %288 }
  0x8d   :  { %v314_v56 = vpop.permute.xlu1 %313  ;;  %v329_v60 = vpop.permute.xlu0 %328 }
  0x93   :  { %v264_v1 = vpop.permute.xlu2 %263 }
  0x95   :  { %v309_v58 = vpop.permute.xlu1 %308  ;;  %v304_v63 = vpop.permute.xlu0 %303 }
  0x9b   :  { %v259_v7 = vpop.permute.xlu2 %258 }
  0x9d   :  { %v284_v61 = vpop.permute.xlu1 %283  ;;  %v299_v3 = vpop.permute.xlu0 %298 }
  0xa5   :  { %v279_v0 = vpop.permute.xlu1 %278 }
  0xad   :  { %v254_v4 = vpop.permute.xlu1 %253 }
  0xc1   :  { %v187_v11 = vpop.f32.mrf.mxu0 }
  0xc2   :  { %v188_v41 = vadd.f32 %v187_v11, %v84_v40 }
  0xc4   :  { %v207_v45 = vmax.f32 %v188_v41, 0.0 }
  0xc9   :  { %v189_v12 = vpop.f32.mrf.mxu0 }
  0xca   :  { %v190_v37 = vadd.f32 %v189_v12, %v89_v36 }
  0xcc   :  { %v208_v43 = vmax.f32 %v190_v37, 0.0 }
  0xce   :  { %v215_v46 = vpack.c.bf16 %v208_v43, %v207_v45 }
  0xd1   :  { %v192_v13 = vpop.f32.mrf.mxu0 }
  0xd2   :  { %v193_v34 = vadd.f32 %v192_v13, %v94_v20  ;;  %v274_v13 = vpop.permute.xlu0 %273 }
  0xd4   :  { %v209_v42 = vmax.f32 %v193_v34, 0.0 }
  0xd9   :  { %v194_v14 = vpop.f32.mrf.mxu0 }
  0xda   :  { %v195_v31 = vadd.f32 %v194_v14, %v99_v30 }
  0xdc   :  { %v210_v38 = vmax.f32 %v195_v31, 0.0 }
  0xde   :  { %v216_v44 = vpack.c.bf16 %v210_v38, %v209_v42 }
  0xe1   :  { %v197_v15 = vpop.f32.mrf.mxu0 }
  0xe2   :  { %v198_v27 = vadd.f32 %v197_v15, %v104_v17 }
  0xe4   :  { %v211_v35 = vmax.f32 %v198_v27, 0.0 }
  0xe9   :  { %v199_v16 = vpop.f32.mrf.mxu0 }
  0xea   :  { %v200_v25 = vadd.f32 %v199_v16, %v109_v21 }
  0xec   :  { %v212_v32 = vmax.f32 %v200_v25, 0.0 }
  0xee   :  { %v217_v39 = vpack.c.bf16 %v212_v32, %v211_v35 }
  0xf1   :  { %v202_v19 = vpop.f32.mrf.mxu0 }
  0xf2   :  { %v203_v22 = vadd.f32 %v202_v19, %v114_v18  ;;  %v269_v18 = vpop.permute.xlu0 %268 }
  0xf4   :  { %v213_v28 = vmax.f32 %v203_v22, 0.0 }
  0xf9   :  { %v204_v24 = vpop.f32.mrf.mxu0 }
  0xfa   :  { %v205_v26 = vadd.f32 %v204_v24, %v119_v23 }
  0xfc   :  { %v214_v29 = vmax.f32 %v205_v26, 0.0 }
  0xfe   :  { %v218_v33 = vpack.c.bf16 %v214_v29, %v213_v28 }
 0x100   :  { %400 = vmatpush.bf16.msra.mxu1 %v218_v33  ;;  %769 = vmatpush.bf16.msra.mxu3 %v218_v33 }
 0x104   :  { %401 = vmatpush.bf16.msra.mxu1 %v217_v39  ;;  %770 = vmatpush.bf16.msra.mxu3 %v217_v39 }
 0x108   :  { %402 = vmatpush.bf16.msra.mxu1 %v216_v44  ;;  %771 = vmatpush.bf16.msra.mxu3 %v216_v44 }
 0x10c   :  { %403 = vmatpush.bf16.msra.mxu1 %v215_v46  ;;  %772 = vmatpush.bf16.msra.mxu3 %v215_v46 }
 0x10f   :  { %723 = vmatmul.msk.bf16.vlgmr.msra.gmra.mxu1 %vm371_vm1, %v756_v47  ;;  %729 = vmatmul.msk.bf16.vlgmr.msra.gmra.mxu3 %vm371_vm1, %v762_v48 }
 0x11f   :  { %724 = vmatmul.msk.bf16.gmra.mxu1 %vm371_vm1, %v757_v49  ;;  %730 = vmatmul.msk.bf16.gmra.mxu3 %vm371_vm1, %v763_v50 }
 0x12f   :  { %725 = vmatmul.msk.bf16.gmra.mxu1 %vm371_vm1, %v758_v51 }
 0x13f   :  { %726 = vmatmul.msk.bf16.gmra.mxu1 %vm371_vm1, %v759_v52 }
 0x14f   :  { %727 = vmatmul.msk.bf16.gmra.mxu1 %vm371_vm1, %v760_v53 }
 0x15f   :  { %728 = vmatmul.msk.bf16.gmra.mxu1 %vm371_vm1, %v761_v54 }
 0x18c   :  { %v405_v2 = vpop.f32.mrf.mxu1 }
 0x18d   :  { %v406_v6 = vadd.f32 %v405_v2, %v254_v4 }
 0x18f   :  { %v445_v10 = vmax.f32 %v406_v6, 0.0 }
 0x192   :  { %v435_v5 = vpop.f32.mrf.mxu3 }
 0x193   :  { %v436_v29 = vadd.f32 %v435_v5, %v314_v56 }
 0x194   :  { %v407_v8 = vpop.f32.mrf.mxu1 }
 0x195   :  { %v408_v9 = vadd.f32 %v407_v8, %v259_v7  ;;  %v457_v34 = vmax.f32 %v436_v29, 0.0 }
 0x197   :  { %v446_v11 = vmax.f32 %v408_v9, 0.0  ;;  %v523_v9 = vpop.permute.xlu1 %522 }
 0x199   :  { %v461_v12 = vpack.c.bf16 %v446_v11, %v445_v10  ;;  %v518_v10 = vpop.permute.xlu0 %517 }
 0x19a   :  { %v437_v14 = vpop.f32.mrf.mxu3 }
 0x19b   :  { %v438_v26 = vadd.f32 %v437_v14, %v319_v57 }
 0x19c   :  { %v410_v15 = vpop.f32.mrf.mxu1 }
 0x19d   :  { %v411_v17 = vadd.f32 %v410_v15, %v264_v1  ;;  %v458_v32 = vmax.f32 %v438_v26, 0.0 }
 0x19f   :  { %v447_v21 = vmax.f32 %v411_v17, 0.0  ;;  %v467_v35 = vpack.c.bf16 %v458_v32, %v457_v34 }
 0x1a1   :  { %v513_v15 = vpop.permute.xlu0 %512 }
 0x1a2   :  { %v440_v16 = vpop.f32.mrf.mxu3 }
 0x1a3   :  { %v441_v23 = vadd.f32 %v440_v16, %v324_v55 }
 0x1a4   :  { %v412_v19 = vpop.f32.mrf.mxu1 }
 0x1a5   :  { %v413_v20 = vadd.f32 %v412_v19, %v269_v18  ;;  %v459_v30 = vmax.f32 %v441_v23, 0.0 }
 0x1a7   :  { %v448_v22 = vmax.f32 %v413_v20, 0.0 }
 0x1a9   :  { %v462_v24 = vpack.c.bf16 %v448_v22, %v447_v21  ;;  %v488_v32 = vpop.permute.xlu0 %487 }
 0x1aa   :  { %v442_v25 = vpop.f32.mrf.mxu3 }
 0x1ab   :  { %v443_v27 = vadd.f32 %v442_v25, %v329_v60 }
 0x1ac   :  { %v415_v28 = vpop.f32.mrf.mxu1 }
 0x1ad   :  { %v460_v31 = vmax.f32 %v443_v27, 0.0  ;;  %v416_v57 = vadd.f32 %v415_v28, %v274_v13  ;;  %v498_v13 = vpop.permute.xlu1 %497 }
 0x1af   :  { %v468_v33 = vpack.c.bf16 %v460_v31, %v459_v30  ;;  %v449_v2 = vmax.f32 %v416_v57, 0.0 }
 0x1b1   :  { %549 = vmatpush.bf16.msra.mxu2 %v468_v33 }
 0x1b4   :  { %v417_v36 = vpop.f32.mrf.mxu1 }
 0x1b5   :  { %550 = vmatpush.bf16.msra.mxu2 %v467_v35  ;;  %v418_v54 = vadd.f32 %v417_v36, %v279_v0  ;;  %v767_v0 = vld [vmem:[%s1085_s5 + $0x18] sm:$0xff]  ;;  %v493_v28 = vpop.permute.xlu1 %492 }
 0x1b7   :  { %v450_v1 = vmax.f32 %v418_v54, 0.0 }
 0x1bc   :  { %v420_v37 = vpop.f32.mrf.mxu1 }
 0x1bd   :  { %v421_v52 = vadd.f32 %v420_v37, %v284_v61  ;;  %v765_v61 = vld [vmem:[%s1085_s5 + $0x8] sm:$0xff] }
 0x1bf   :  { %v451_v60 = vmax.f32 %v421_v52, 0.0  ;;  %v637_v52 = vpop.permute.xlu1 %636 }
 0x1c4   :  { %v422_v38 = vpop.f32.mrf.mxu1 }
 0x1c5   :  { %v423_v49 = vadd.f32 %v422_v38, %v289_v62  ;;  %v766_v62 = vld [vmem:[%s1085_s5 + $0x10] sm:$0xff] }
 0x1c7   :  { %v452_v55 = vmax.f32 %v423_v49, 0.0 }
 0x1cc   :  { %v425_v39 = vpop.f32.mrf.mxu1 }
 0x1cd   :  { %v426_v46 = vadd.f32 %v425_v39, %v294_v59  ;;  %v764_v59 = vld [vmem:[%s1085_s5] sm:$0xff] }
 0x1ce   :  { %v768_v39 = vld [vmem:[%s1086_s7] sm:$0xff] }
 0x1cf   :  { %v453_v53 = vmax.f32 %v426_v46, 0.0 }
 0x1d4   :  { %v427_v40 = vpop.f32.mrf.mxu1 }
 0x1d5   :  { %v428_v44 = vadd.f32 %v427_v40, %v299_v3 }
 0x1d7   :  { %v454_v50 = vmax.f32 %v428_v44, 0.0  ;;  %v602_v44 = vpop.permute.xlu0 %601 }
 0x1d9   :  { %v465_v56 = vpack.c.bf16 %v454_v50, %v453_v53 }
 0x1dc   :  { %v430_v41 = vpop.f32.mrf.mxu1 }
 0x1dd   :  { %v431_v42 = vadd.f32 %v430_v41, %v304_v63  ;;  %v464_v63 = vpack.c.bf16 %v452_v55, %v451_v60 }
 0x1df   :  { %v455_v47 = vmax.f32 %v431_v42, 0.0 }
 0x1e4   :  { %v432_v43 = vpop.f32.mrf.mxu1 }
 0x1e5   :  { %v433_v45 = vadd.f32 %v432_v43, %v309_v58  ;;  %v463_v58 = vpack.c.bf16 %v450_v1, %v449_v2  ;;  %v657_v2 = vpop.permute.xlu0 %656 }
 0x1e7   :  { %v456_v48 = vmax.f32 %v433_v45, 0.0 }
 0x1e9   :  { %v466_v51 = vpack.c.bf16 %v456_v48, %v455_v47 }
 0x1eb   :  { %551 = vmatpush.bf16.msra.mxu2 %v466_v51 }
 0x1ef   :  { %552 = vmatpush.bf16.msra.mxu2 %v465_v56 }
 0x1f3   :  { %553 = vmatpush.bf16.msra.mxu2 %v464_v63 }
 0x1f7   :  { %554 = vmatpush.bf16.msra.mxu2 %v463_v58 }
 0x1fb   :  { %555 = vmatpush.bf16.msra.mxu2 %v462_v24 }
 0x1ff   :  { %556 = vmatpush.bf16.msra.mxu2 %v461_v12  ;;  %v508_v12 = vpop.permute.xlu2 %507 }
 0x202   :  { %557 = vmatmul.bf16.vlgmr.msra.gmra.mxu2 %v764_v59  ;;  %v659_v59 = vperm.slane %v657_v2, 0 }
 0x207   :  { %v503_v22 = vpop.permute.xlu2 %502 }
 0x20f   :  { %v597_v40 = vpop.permute.xlu2 %596 }
 0x212   :  { %562 = vmatmul.bf16.gmra.mxu2 %v765_v61 }
 0x217   :  { %v642_v53 = vpop.permute.xlu2 %641 }
 0x222   :  { %567 = vmatmul.bf16.gmra.mxu2 %v766_v62 }
 0x232   :  { %572 = vmatmul.bf16.gmra.mxu2 %v767_v0 }
 0x285   :  { %v558_v3 = vpop.f32.mrf.mxu2 }
 0x286   :  { %v559_v33 = vadd.f32 %v558_v3, %v488_v32 }
 0x288   :  { %v578_v37 = vmax.f32 %v559_v33, 0.0 }
 0x28d   :  { %v560_v4 = vpop.f32.mrf.mxu2 }
 0x28e   :  { %v561_v29 = vadd.f32 %v560_v4, %v493_v28 }
 0x290   :  { %v579_v35 = vmax.f32 %v561_v29, 0.0 }
 0x292   :  { %v586_v38 = vpack.c.bf16 %v579_v35, %v578_v37 }
 0x295   :  { %v563_v5 = vpop.f32.mrf.mxu2 }
 0x296   :  { %v564_v26 = vadd.f32 %v563_v5, %v498_v13 }
 0x298   :  { %v580_v34 = vmax.f32 %v564_v26, 0.0 }
 0x29d   :  { %v565_v6 = vpop.f32.mrf.mxu2 }
 0x29e   :  { %v566_v23 = vadd.f32 %v565_v6, %v503_v22 }
 0x2a0   :  { %v581_v30 = vmax.f32 %v566_v23, 0.0 }
 0x2a2   :  { %v587_v36 = vpack.c.bf16 %v581_v30, %v580_v34 }
 0x2a5   :  { %v568_v7 = vpop.f32.mrf.mxu2 }
 0x2a6   :  { %v569_v19 = vadd.f32 %v568_v7, %v508_v12 }
 0x2a8   :  { %v582_v27 = vmax.f32 %v569_v19, 0.0 }
 0x2ad   :  { %v570_v8 = vpop.f32.mrf.mxu2 }
 0x2ae   :  { %v571_v17 = vadd.f32 %v570_v8, %v513_v15 }
 0x2b0   :  { %v583_v24 = vmax.f32 %v571_v17, 0.0 }
 0x2b2   :  { %v588_v31 = vpack.c.bf16 %v583_v24, %v582_v27 }
 0x2b5   :  { %v573_v11 = vpop.f32.mrf.mxu2 }
 0x2b6   :  { %v574_v14 = vadd.f32 %v573_v11, %v518_v10 }
 0x2b8   :  { %v584_v20 = vmax.f32 %v574_v14, 0.0 }
 0x2bd   :  { %v575_v16 = vpop.f32.mrf.mxu2 }
 0x2be   :  { %v576_v18 = vadd.f32 %v575_v16, %v523_v9 }
 0x2c0   :  { %v585_v21 = vmax.f32 %v576_v18, 0.0 }
 0x2c2   :  { %v589_v25 = vpack.c.bf16 %v585_v21, %v584_v20 }
 0x2c4   :  { %616 = vmatpush.bf16.msrb.mxu3 %v589_v25 }
 0x2c8   :  { %617 = vmatpush.bf16.msrb.mxu3 %v588_v31 }
 0x2cc   :  { %618 = vmatpush.bf16.msrb.mxu3 %v587_v36 }
 0x2d0   :  { %619 = vmatpush.bf16.msrb.mxu3 %v586_v38 }
 0x2d3   :  { %751 = vmatmul.msk.bf16.vlgmr.msrb.gmra.mxu3 %vm371_vm1, %v768_v39 }
 0x356   :  { %v621_v41 = vpop.f32.mrf.mxu3 }
 0x357   :  { %v622_v42 = vadd.f32 %v621_v41, %v597_v40 }
 0x359   :  { %v626_v43 = vmax.f32 %v622_v42, 0.0 }
 0x35b   :  { %v628_v46 = vpack.c.bf16 %v626_v43, %v626_v43 }
 0x35d   :  { %v632_v49 = vunpack.c.l.bf16 %v628_v46 }
 0x35e   :  { %v623_v45 = vpop.f32.mrf.mxu3 }
 0x35f   :  { %v624_v47 = vadd.f32 %v623_v45, %v602_v44  ;;  %v644_v54 = vmul.f32 %v637_v52, %v632_v49 }
 0x361   :  { %v627_v48 = vmax.f32 %v624_v47, 0.0 }
 0x363   :  { %v629_v50 = vpack.c.bf16 %v627_v48, %v627_v48 }
 0x365   :  { %v633_v51 = vunpack.c.l.bf16 %v629_v50 }
 0x367   :  { %v645_v55 = vmul.f32 %v642_v53, %v633_v51 }
 0x369   :  { %v646_v56 = vadd.f32 %v645_v55, %v644_v54 }
 0x36b   :  { %v647_v57 = vrot.slane %v646_v56, 4 }
 0x36d   :  { %v648_v60 = vadd.f32 %v647_v57, %v646_v56 }
 0x36f   :  { %v649_v1 = vrot.slane %v648_v60, 2 }
 0x371   :  { %v650_v63 = vadd.f32 %v649_v1, %v648_v60 }
 0x373   :  { %v651_v58 = vrot.slane %v650_v63, 1 }
 0x375   :  { %v652_v61 = vadd.f32 %v651_v58, %v650_v63 }
 0x377   :  { %v660_v62 = vadd.f32 %v659_v59, %v652_v61 }
 0x379   :  { %v661_v0 = vsub.f32 0.0, %v660_v62 }
 0x37b   :  { %v662_v3 = vmul.f32 1.442695, %v661_v0 }
 0x37d   :  { %777 = vpow2.f32 %v662_v3 }
 0x383   :  { %v778_v4 = vpop.eup %777 }
 0x384   :  { %v664_v5 = vadd.f32 1.0, %v778_v4 }
 0x386   :  { %779 = vrcp.f32 %v664_v5 }
 0x38c   :  { %v780_v6 = vpop.eup %779 }
 0x38d   :  { %666 = vst [vmem:[%s1087_s11] sm:$0x1] %v780_v6 }

</bundles_post_ra>
